<compile_context>
chip_gen: v5e
topology: v5e:2x2
jax: 0.10.0
libtpu: 0.0.40
codegen_flags: <defaults>
</compile_context>

<pallas_src>
import math
from functools import reduce
from typing import NamedTuple

import jax
import jax.numpy as jnp
from jax.experimental import pallas as pl
from jax.experimental.pallas import tpu as pltpu


def _round_up(n, m):
    return ((n + m - 1) // m) * m


def _make_mlp_kernel(num_layers):
    """Fused MLP kernel: (x, w0, b0, w1, b1, ..., out) -> out."""
    def kernel(*refs):
        x_ref = refs[0]
        o_ref = refs[-1]
        param_refs = refs[1:-1]  # alternating w_i, b_i
        h = x_ref[...].astype(jnp.float32)
        for i in range(num_layers):
            w = param_refs[2 * i][...]
            b = param_refs[2 * i + 1][...].astype(jnp.float32)  # (1, out) broadcasts
            # Feed the MXU in the weights' dtype (bf16 halves weight DMA on
            # v6e/v7x, full-rate on v5e too); accumulate in f32; bias add /
            # ReLU stay f32 (no bf16 VPU on v5e).
            h = jnp.dot(h.astype(w.dtype), w,
                        preferred_element_type=jnp.float32) + b
            if i < num_layers - 1:  # ReLU on all but the last layer
                h = jnp.maximum(h, 0.0)
        o_ref[...] = h.astype(o_ref.dtype)
    return kernel


class PreparedDQN(NamedTuple):
    layers: tuple        # ((w0_p, b0_p), (w1_p, b1_p), ...), padded + cast
    state_size: int
    action_size: int


def prepare_dqn_params(params, param_dtype=jnp.float32):
    """Pad/cast parameters ONCE (per parameter update), not per forward call.

    params: list of (W, b) with W shape (in, out) (== PyTorch weight.T), b (out,).
    Only output dims are lane-padded to multiples of 128; layer 0 keeps its
    input dim at state_size so x needs no feature padding.  Zero padding is
    exact (padded units stay 0 through ReLU and contribute nothing).
    """
    state_size = params[0][0].shape[0]
    action_size = params[-1][0].shape[1]
    out_dims = [_round_up(w.shape[1], 128) for (w, _) in params]
    in_dims = [state_size] + out_dims[:-1]

    layers = []
    for (w, b), din, dout in zip(params, in_dims, out_dims):
        w_p = jnp.zeros((din, dout), param_dtype)
        w_p = w_p.at[: w.shape[0], : w.shape[1]].set(w.astype(param_dtype))
        b_p = jnp.zeros((1, dout), jnp.float32)
        b_p = b_p.at[0, : b.shape[0]].set(b.astype(jnp.float32))
        layers.append((w_p, b_p))
    return PreparedDQN(tuple(layers), state_size, action_size)


def dqn_forward(x, prep: PreparedDQN, *, tile_b=None):
    """DQN forward pass in a single batch-tiled Pallas kernel.

    x:    (batch, state_size) float32
    prep: output of prepare_dqn_params().
    Returns (batch, action_size) Q-values.
    """
    num_layers = len(prep.layers)
    batch, state_size = x.shape
    assert state_size == prep.state_size, "state_size mismatch vs prepared params"
    out_pad = prep.layers[-1][0].shape[1]

    # ---- batch tiling: ~2 large tiles (>=512 rows for replay batches) so
    # per-grid-step overhead amortizes AND the parallel batch axis can still
    # shard across v7x's 2 TensorCores; VMEM stays tiny even at tile_b=1024.
    if tile_b is None:
        tile_b = max(8, min(1024, _round_up(pl.cdiv(batch, 2), 8)))
    tile_b = max(8, _round_up(tile_b, 8))
    grid = (pl.cdiv(batch, tile_b),)  # ragged last tile handled by OOB masking

    flat_args = [x]
    in_specs = [pl.BlockSpec((tile_b, state_size), lambda i: (i, 0))]
    for (w_p, b_p) in prep.layers:
        flat_args.append(w_p)
        in_specs.append(pl.BlockSpec(w_p.shape, lambda i: (0, 0)))  # resident
        flat_args.append(b_p)
        in_specs.append(pl.BlockSpec(b_p.shape, lambda i: (0, 0)))  # resident

    out_spec = pl.BlockSpec((tile_b, out_pad), lambda i: (i, 0))
    out_shape = jax.ShapeDtypeStruct((batch, out_pad), x.dtype)

    # Advisory cost estimate so XLA schedules this call sensibly inside a
    # larger RL training graph.
    flops = 2 * batch * sum(w.shape[0] * w.shape[1] for (w, _) in prep.layers)
    bytes_accessed = (
        x.size * x.dtype.itemsize
        + sum(w.size * w.dtype.itemsize + b.size * b.dtype.itemsize
              for (w, b) in prep.layers)
        + batch * out_pad * jnp.dtype(x.dtype).itemsize
    )
    cost = pl.CostEstimate(flops=flops, transcendentals=0,
                           bytes_accessed=bytes_accessed)

    out_padded = pl.pallas_call(
        _make_mlp_kernel(num_layers),
        out_shape=out_shape,
        grid=grid,
        in_specs=in_specs,
        out_specs=out_spec,
        compiler_params=pltpu.CompilerParams(
            dimension_semantics=("parallel",)),  # batch tiles are independent
        cost_estimate=cost,
    )(*flat_args)

    # Padded action columns are exact zeros-of-weights artifacts; slice off.
    # (For a latency-critical act() path, argmax over these columns could be
    # fused into the kernel epilogue instead of materializing this slice.)
    return out_padded[:, : prep.action_size]


def init_dqn_params(key, state_size, fc_layers, action_size):
    """Deterministic init matching nn.Linear defaults: U(-1/sqrt(fan_in), ...)."""
    dims = [state_size] + list(fc_layers) + [action_size]
    params = []
    for i in range(len(dims) - 1):
        fan_in, fan_out = dims[i], dims[i + 1]
        key, kw, kb = jax.random.split(key, 3)
        bound = 1.0 / math.sqrt(fan_in)
        # Stored directly as (in, out) == PyTorch weight.T
        w = jax.random.uniform(kw, (fan_in, fan_out), jnp.float32, -bound, bound)
        b = jax.random.uniform(kb, (fan_out,), jnp.float32, -bound, bound)
        params.append((w, b))
    return params


def dqn_forward_ref(x, params):
    """Pure-JAX reference mirroring the PyTorch forward (ReLU on all but last)."""
    h = reduce(lambda a, wb: jnp.maximum(a @ wb[0] + wb[1], 0.0), params[:-1], x)
    w, b = params[-1]
    return h @ w + b


if __name__ == "__main__":
    # Banana-env config: state_size=37 (non-aligned, exercises K=state matmul),
    # two hidden layers of 64, action_size=4.
    state_size, fc_layers, action_size = 37, [64, 64], 4

    key = jax.random.PRNGKey(0)
    key, kx1, kx2, kx3 = jax.random.split(key, 4)
    params = init_dqn_params(key, state_size, fc_layers, action_size)

    # Pad / cast parameters ONCE (per perf review), outside the per-call path.
    prep_f32 = prepare_dqn_params(params, param_dtype=jnp.float32)
    prep_bf16 = prepare_dqn_params(params, param_dtype=jnp.bfloat16)

    # 1) Tiny batch -> single tile, exact match vs reference.
    x_small = jax.random.normal(kx1, (8, state_size), jnp.float32)
    out_small = jax.block_until_ready(dqn_forward(x_small, prep_f32))
    ref_small = dqn_forward_ref(x_small, params)
    assert out_small.shape == (8, action_size)
    assert jnp.allclose(out_small, ref_small, atol=1e-4, rtol=1e-4), \
        "small-batch mismatch vs pure-JAX reference"

    # 2) Replay-sized batch -> default tiling (tile_b=504, grid=(2,)), ragged
    #    last tile handled by Pallas OOB masking; no wrapper-side padding.
    x_big = jax.random.normal(kx2, (1000, state_size), jnp.float32)
    out_big = jax.block_until_ready(dqn_forward(x_big, prep_f32))
    ref_big = dqn_forward_ref(x_big, params)
    assert out_big.shape == (1000, action_size)
    assert jnp.allclose(out_big, ref_big, atol=1e-4, rtol=1e-4), \
        "tiled-batch mismatch vs pure-JAX reference"

    # 3) Explicit tile override with a batch not divisible by the tile.
    x_odd = jax.random.normal(kx3, (250, state_size), jnp.float32)
    out_odd = jax.block_until_ready(dqn_forward(x_odd, prep_f32, tile_b=128))
    ref_odd = dqn_forward_ref(x_odd, params)
    assert out_odd.shape == (250, action_size)
    assert jnp.allclose(out_odd, ref_odd, atol=1e-4, rtol=1e-4), \
        "ragged-tile mismatch vs pure-JAX reference"

    # 4) bf16 weights (v6e/v7x DMA-savings path), f32 accumulation.  Note:
    #    activations are also quantized to bf16 at every layer's MXU input, so
    #    error compounds -> looser tolerance (fine for DQN inference).
    out_bf16 = jax.block_until_ready(dqn_forward(x_big, prep_bf16))
    assert jnp.allclose(out_bf16, ref_big, atol=5e-2, rtol=5e-2), \
        "bf16-weight path mismatch vs pure-JAX reference"

    print("KERNEL_OK")
</pallas_src>

<mosaic_0001>
module attributes {stable_mosaic.version = 11 : i64} {
  func.func @kernel(%arg0: i32, %arg1: memref<8x37xf32, #tpu.memory_space<vmem>>, %arg2: memref<37x128xf32, #tpu.memory_space<vmem>>, %arg3: memref<1x128xf32, #tpu.memory_space<vmem>>, %arg4: memref<128x128xf32, #tpu.memory_space<vmem>>, %arg5: memref<1x128xf32, #tpu.memory_space<vmem>>, %arg6: memref<128x128xf32, #tpu.memory_space<vmem>>, %arg7: memref<1x128xf32, #tpu.memory_space<vmem>>, %arg8: memref<8x128xf32, #tpu.memory_space<vmem>>) attributes {dimension_semantics = [#tpu.dimension_semantics<parallel>], iteration_bounds = array<i64: 1>, scalar_prefetch = 0 : i64, scratch_operands = 0 : i64, tpu.core_type = #tpu.core_type<tc>, window_params = [{transform_indices = @transform_0, window_bounds = array<i64: 8, 37>}, {pipeline_mode = #tpu.pipeline_mode<synchronous>, transform_indices = @transform_1, window_bounds = array<i64: 37, 128>}, {pipeline_mode = #tpu.pipeline_mode<synchronous>, transform_indices = @transform_2, window_bounds = array<i64: 1, 128>}, {pipeline_mode = #tpu.pipeline_mode<synchronous>, transform_indices = @transform_3, window_bounds = array<i64: 128, 128>}, {pipeline_mode = #tpu.pipeline_mode<synchronous>, transform_indices = @transform_4, window_bounds = array<i64: 1, 128>}, {pipeline_mode = #tpu.pipeline_mode<synchronous>, transform_indices = @transform_5, window_bounds = array<i64: 128, 128>}, {pipeline_mode = #tpu.pipeline_mode<synchronous>, transform_indices = @transform_6, window_bounds = array<i64: 1, 128>}, {transform_indices = @transform_7, window_bounds = array<i64: 8, 128>}]} {
    %c0 = arith.constant 0 : index
    %c0_0 = arith.constant 0 : index
    %0 = vector.load %arg1[%c0, %c0_0] : memref<8x37xf32, #tpu.memory_space<vmem>>, vector<8x37xf32>
    %c0_1 = arith.constant 0 : index
    %c0_2 = arith.constant 0 : index
    %1 = vector.load %arg2[%c0_1, %c0_2] : memref<37x128xf32, #tpu.memory_space<vmem>>, vector<37x128xf32>
    %c0_3 = arith.constant 0 : index
    %c0_4 = arith.constant 0 : index
    %2 = vector.load %arg3[%c0_3, %c0_4] : memref<1x128xf32, #tpu.memory_space<vmem>>, vector<1x128xf32>
    %cst = arith.constant dense<0.000000e+00> : vector<8x128xf32>
    %3 = tpu.matmul %0, %1, %cst {dimension_numbers = #tpu.dot_dimension_numbers<[1], [0], [0], [1], [0, 0, 1, 1], [], []>} : vector<8x37xf32>, vector<37x128xf32>, vector<8x128xf32> -> vector<8x128xf32>
    %4 = vector.broadcast %2 : vector<1x128xf32> to vector<8x128xf32>
    %5 = arith.addf %3, %4 : vector<8x128xf32>
    %cst_5 = arith.constant 0.000000e+00 : f32
    %6 = vector.broadcast %cst_5 : f32 to vector<8x128xf32>
    %7 = arith.maximumf %5, %6 : vector<8x128xf32>
    %c0_6 = arith.constant 0 : index
    %c0_7 = arith.constant 0 : index
    %8 = vector.load %arg4[%c0_6, %c0_7] : memref<128x128xf32, #tpu.memory_space<vmem>>, vector<128x128xf32>
    %c0_8 = arith.constant 0 : index
    %c0_9 = arith.constant 0 : index
    %9 = vector.load %arg5[%c0_8, %c0_9] : memref<1x128xf32, #tpu.memory_space<vmem>>, vector<1x128xf32>
    %cst_10 = arith.constant dense<0.000000e+00> : vector<8x128xf32>
    %10 = tpu.matmul %7, %8, %cst_10 {dimension_numbers = #tpu.dot_dimension_numbers<[1], [0], [0], [1], [0, 0, 1, 1], [], []>} : vector<8x128xf32>, vector<128x128xf32>, vector<8x128xf32> -> vector<8x128xf32>
    %11 = vector.broadcast %9 : vector<1x128xf32> to vector<8x128xf32>
    %12 = arith.addf %10, %11 : vector<8x128xf32>
    %cst_11 = arith.constant 0.000000e+00 : f32
    %13 = vector.broadcast %cst_11 : f32 to vector<8x128xf32>
    %14 = arith.maximumf %12, %13 : vector<8x128xf32>
    %c0_12 = arith.constant 0 : index
    %c0_13 = arith.constant 0 : index
    %15 = vector.load %arg6[%c0_12, %c0_13] : memref<128x128xf32, #tpu.memory_space<vmem>>, vector<128x128xf32>
    %c0_14 = arith.constant 0 : index
    %c0_15 = arith.constant 0 : index
    %16 = vector.load %arg7[%c0_14, %c0_15] : memref<1x128xf32, #tpu.memory_space<vmem>>, vector<1x128xf32>
    %cst_16 = arith.constant dense<0.000000e+00> : vector<8x128xf32>
    %17 = tpu.matmul %14, %15, %cst_16 {dimension_numbers = #tpu.dot_dimension_numbers<[1], [0], [0], [1], [0, 0, 1, 1], [], []>} : vector<8x128xf32>, vector<128x128xf32>, vector<8x128xf32> -> vector<8x128xf32>
    %18 = vector.broadcast %16 : vector<1x128xf32> to vector<8x128xf32>
    %19 = arith.addf %17, %18 : vector<8x128xf32>
    %c0_17 = arith.constant 0 : index
    %c0_18 = arith.constant 0 : index
    %20 = vector.load %arg8[%c0_17, %c0_18] : memref<8x128xf32, #tpu.memory_space<vmem>>, vector<8x128xf32>
    tpu.vector_store %arg8[%c0_17, %c0_18], %19 {strides = array<i32>} : memref<8x128xf32, #tpu.memory_space<vmem>>, vector<8x128xf32>,
    return
  }
  func.func @transform_0(%arg0: i32) -> (i32, i32) {
    %c0_i32 = arith.constant 0 : i32
    %c0_i32_0 = arith.constant 0 : i32
    return %arg0, %c0_i32 : i32, i32
  }
  func.func @transform_1(%arg0: i32) -> (i32, i32) {
    %c0_i32 = arith.constant 0 : i32
    %c0_i32_0 = arith.constant 0 : i32
    %c0_i32_1 = arith.constant 0 : i32
    return %c0_i32, %c0_i32_0 : i32, i32
  }
  func.func @transform_2(%arg0: i32) -> (i32, i32) {
    %c0_i32 = arith.constant 0 : i32
    %c0_i32_0 = arith.constant 0 : i32
    %c0_i32_1 = arith.constant 0 : i32
    return %c0_i32, %c0_i32_0 : i32, i32
  }
  func.func @transform_3(%arg0: i32) -> (i32, i32) {
    %c0_i32 = arith.constant 0 : i32
    %c0_i32_0 = arith.constant 0 : i32
    %c0_i32_1 = arith.constant 0 : i32
    return %c0_i32, %c0_i32_0 : i32, i32
  }
  func.func @transform_4(%arg0: i32) -> (i32, i32) {
    %c0_i32 = arith.constant 0 : i32
    %c0_i32_0 = arith.constant 0 : i32
    %c0_i32_1 = arith.constant 0 : i32
    return %c0_i32, %c0_i32_0 : i32, i32
  }
  func.func @transform_5(%arg0: i32) -> (i32, i32) {
    %c0_i32 = arith.constant 0 : i32
    %c0_i32_0 = arith.constant 0 : i32
    %c0_i32_1 = arith.constant 0 : i32
    return %c0_i32, %c0_i32_0 : i32, i32
  }
  func.func @transform_6(%arg0: i32) -> (i32, i32) {
    %c0_i32 = arith.constant 0 : i32
    %c0_i32_0 = arith.constant 0 : i32
    %c0_i32_1 = arith.constant 0 : i32
    return %c0_i32, %c0_i32_0 : i32, i32
  }
  func.func @transform_7(%arg0: i32) -> (i32, i32) {
    %c0_i32 = arith.constant 0 : i32
    %c0_i32_0 = arith.constant 0 : i32
    return %arg0, %c0_i32 : i32, i32
  }
}

</mosaic_0001>

<bundles_post_ra>
// kernel: tpu_custom_call.1
= control target key start
LH: loop header
LB: loop body
LE: loop exit
PB: predicated region body
PF: predicated region fallthrough
CT: control target
= control target key end

     0   :  { %12 = vsyncpa [#allocation3], 0  ;;  %s439_s0 = inlined_call_operand.hbm [shape: f32[8,37], index: 0, kind: input, shape index: {}]   ;;  %s440_s1 = inlined_call_operand.hbm [shape: f32[37,128], index: 1, kind: input, shape index: {}]   ;;  %s441_s2 = inlined_call_operand.vmem [shape: f32[1,128], index: 2, kind: input, shape index: {}]   ;;  %s442_s3 = inlined_call_operand.hbm [shape: f32[128,128], index: 3, kind: input, shape index: {}]   ;;  %s443_s4 = inlined_call_operand.vmem [shape: f32[1,128], index: 4, kind: input, shape index: {}]   ;;  %s444_s5 = inlined_call_operand.hbm [shape: f32[128,128], index: 5, kind: input, shape index: {}]   ;;  %s445_s6 = inlined_call_operand.vmem [shape: f32[1,128], index: 6, kind: input, shape index: {}]   ;;  %s446_s7 = inlined_call_operand.hbm [shape: f32[8,128], index: 7, kind: output, shape index: {}]  }
   0x1   :  { %13 = vsyncpa [#allocation6], 0 }
   0x2   :  { %14 = vsyncpa [#allocation9], 0  ;;  %s31_s26 = sshll.u32 %s440_s1, 4  ;;  %s32_s26 = int_to_ptr.hbm [resolvable:$true] %s31_s26 }
   0x3   :  { %15 = vsyncpa [#allocation4], 0  ;;  %s368_s27 = smov [#allocation5]   ;;  %s21_s8 = sshll.u32 %s439_s0, 4  ;;  %s22_s8 = int_to_ptr.hbm [resolvable:$true] %s21_s8 }
   0x4   :  { %s33_s28 = sshll.u32 %s368_s27, 4  ;;  %s369_s9 = smov 128   ;;  %s34_s28 = int_to_ptr.vmem [resolvable:$true] %s33_s28 }
   0x5   :  { %s370_s10 = smov 8   ;;  %s371_s11 = smov [#allocation2]  }
   0x6   :  { %39 = dma.hbm_to_vmem [thread:$0]  %s32_s26, 640, %s34_s28, [#allocation6], %s369_s9, %s369_s9, %s370_s10  }
   0x7   :  { %s23_s12 = sshll.u32 %s371_s11, 4  ;;  %s46_s15 = sshll.u32 %s442_s3, 4  ;;  %s24_s12 = int_to_ptr.vmem [resolvable:$true] %s23_s12  ;;  %s47_s15 = int_to_ptr.hbm [resolvable:$true] %s46_s15 }
   0x8   :  { %26 = dma.hbm_to_vmem [thread:$0]  %s22_s8, 128, %s24_s12, [#allocation3]  }
   0x9   :  { %s61_s17 = sshll.u32 %s444_s5, 4  ;;  %s372_s18 = smov [#allocation7]   ;;  %s62_s17 = int_to_ptr.hbm [resolvable:$true] %s61_s17 }
   0xa   :  { %s48_s19 = sshll.u32 %s372_s18, 4  ;;  %s373_s0 = smov [#allocation8]   ;;  %s49_s19 = int_to_ptr.vmem [resolvable:$true] %s48_s19 }
   0xb   :  { %54 = dma.hbm_to_vmem [thread:$0]  %s47_s15, 2048, %s49_s19, [#allocation6], %s369_s9, %s369_s9, %s370_s10  }
   0xc   :  { %s63_s20 = sshll.u32 %s373_s0, 4  ;;  %s64_s20 = int_to_ptr.vmem [resolvable:$true] %s63_s20 }
   0xd   :  { %69 = dma.hbm_to_vmem [thread:$0]  %s62_s17, 2048, %s64_s20, [#allocation9], %s369_s9, %s369_s9, %s370_s10  }
   0xe   :  { %360 = dma.done.wait [#allocation3], 128  }
   0xf   :  { %361 = vsyncadd [#allocation3], 4294967168 }
  0x10   :  { %362 = dma.done.wait [#allocation6], 2688  }
  0x11   :  { %363 = vsyncadd [#allocation6], 4294964608 }
  0x12   :  { %364 = dma.done.wait [#allocation9], 2048  }
  0x13   :  { %365 = vsyncadd [#allocation9], 4294965248  ;;  %vm102_vm0 = vcmask 1044480   ;;  %v93_v0 = vld [vmem:[#allocation5 + $0x20] sm:$0x1f]  ;;  %v92_v1 = vld [vmem:[#allocation5 + $0x18] sm:$0xff] }
  0x14   :  { %228 = vmatpush.msk.msra.mxu0 %vm102_vm0, %v93_v0  ;;  %v91_v2 = vld [vmem:[#allocation5 + $0x10] sm:$0xff]  ;;  %v142_v3 = vld [vmem:[#allocation7 + $0x78] sm:$0xff]  ;;  %v141_v4 = vld [vmem:[#allocation7 + $0x70] sm:$0xff]  ;;  %vm98_vm1 = vcmask 302080   ;;  %s374_s24 = smov [#allocation10]   ;;  %s216_s28 = sshll.u32 %s446_s7, 4  ;;  %s217_s28 = int_to_ptr.hbm [resolvable:$true] %s216_s28 }
  0x15   :  { %147 = vmatpush.msra.mxu1 %v142_v3  ;;  %v90_v5 = vld [vmem:[#allocation5 + $0x8] sm:$0xff]  ;;  %v140_v6 = vld [vmem:[#allocation7 + $0x68] sm:$0xff]  ;;  %v89_v7 = vld [vmem:[#allocation5] sm:$0xff]  ;;  %s214_s25 = sshll.u32 %s374_s24, 4  ;;  %s215_s25 = int_to_ptr.vmem [resolvable:$true] %s214_s25 }
  0x16   :  { %118 = vmatpush.msra.mxu0 %v92_v1  ;;  %v139_v8 = vld [vmem:[#allocation7 + $0x60] sm:$0xff]  ;;  %v88_v9 = vld [vmem:[#allocation2] sm:$0xff]  ;;  %v138_v10 = vld [vmem:[#allocation7 + $0x58] sm:$0xff] }
  0x17   :  { %148 = vmatpush.msra.mxu1 %v141_v4  ;;  %v137_v11 = vld [vmem:[#allocation7 + $0x50] sm:$0xff]  ;;  %v136_v12 = vld [vmem:[#allocation7 + $0x48] sm:$0xff]  ;;  %v135_v13 = vld [vmem:[#allocation7 + $0x40] sm:$0xff] }
  0x18   :  { %119 = vmatpush.msra.mxu0 %v91_v2  ;;  %v134_v14 = vld [vmem:[#allocation7 + $0x38] sm:$0xff]  ;;  %v133_v15 = vld [vmem:[#allocation7 + $0x30] sm:$0xff]  ;;  %v132_v16 = vld [vmem:[#allocation7 + $0x28] sm:$0xff] }
  0x19   :  { %149 = vmatpush.msra.mxu1 %v140_v6  ;;  %v131_v17 = vld [vmem:[#allocation7 + $0x20] sm:$0xff]  ;;  %v130_v18 = vld [vmem:[#allocation7 + $0x18] sm:$0xff]  ;;  %v129_v19 = vld [vmem:[#allocation7 + $0x10] sm:$0xff] }
  0x1a   :  { %120 = vmatpush.msra.mxu0 %v90_v5  ;;  %v128_v20 = vld [vmem:[#allocation7 + $0x8] sm:$0xff]  ;;  %v127_v21 = vld [vmem:[#allocation7] sm:$0xff]  ;;  %v183_v22 = vld [vmem:[#allocation8 + $0x78] sm:$0xff] }
  0x1b   :  { %150 = vmatpush.msra.mxu1 %v139_v8  ;;  %v182_v23 = vld [vmem:[#allocation8 + $0x70] sm:$0xff]  ;;  %188 = vmatpush.msra.mxu2 %v183_v22  ;;  %v181_v24 = vld [vmem:[#allocation8 + $0x68] sm:$0xff]  ;;  %v180_v25 = vld [vmem:[#allocation8 + $0x60] sm:$0xff] }
  0x1c   :  { %121 = vmatpush.msra.mxu0 %v89_v7  ;;  %v179_v26 = vld [vmem:[#allocation8 + $0x58] sm:$0xff]  ;;  %v178_v27 = vld [vmem:[#allocation8 + $0x50] sm:$0xff]  ;;  %v177_v28 = vld [vmem:[#allocation8 + $0x48] sm:$0xff] }
  0x1d   :  { %229 = vmatmul.msk.f32.vlgmr.msra.gmra.mxu0 %vm98_vm1, %v88_v9  ;;  %151 = vmatpush.msra.mxu1 %v138_v10  ;;  %v176_v29 = vld [vmem:[#allocation8 + $0x40] sm:$0xff]  ;;  %v175_v30 = vld [vmem:[#allocation8 + $0x38] sm:$0xff]  ;;  %v174_v31 = vld [vmem:[#allocation8 + $0x30] sm:$0xff] }
  0x1e   :  { %189 = vmatpush.msra.mxu2 %v182_v23  ;;  %v173_v32 = vld [vmem:[#allocation8 + $0x28] sm:$0xff]  ;;  %v172_v33 = vld [vmem:[#allocation8 + $0x20] sm:$0xff]  ;;  %v171_v34 = vld [vmem:[#allocation8 + $0x18] sm:$0xff] }
  0x1f   :  { %152 = vmatpush.msra.mxu1 %v137_v11  ;;  %v237_v35 = vld [vmem:[%s441_s2] ss:$0 sm:$0xff]  ;;  %v169_v40 = vld [vmem:[#allocation8 + $0x8] sm:$0xff]  ;;  %v168_v41 = vld [vmem:[#allocation8] sm:$0xff] }
  0x20   :  { %190 = vmatpush.msra.mxu2 %v181_v24  ;;  %v170_v39 = vld [vmem:[#allocation8 + $0x10] sm:$0xff] }
  0x21   :  { %153 = vmatpush.msra.mxu1 %v136_v12  ;;  %v238_v42 = vld [vmem:[%s443_s4] ss:$0 sm:$0xff] }
  0x22   :  { %191 = vmatpush.msra.mxu2 %v180_v25  ;;  %v239_v46 = vld [vmem:[%s445_s6] ss:$0 sm:$0xff] }
  0x23   :  { %154 = vmatpush.msra.mxu1 %v135_v13 }
  0x24   :  { %192 = vmatpush.msra.mxu2 %v179_v26 }
  0x25   :  { %155 = vmatpush.msra.mxu1 %v134_v14 }
  0x26   :  { %193 = vmatpush.msra.mxu2 %v178_v27 }
  0x27   :  { %156 = vmatpush.msra.mxu1 %v133_v15 }
  0x28   :  { %194 = vmatpush.msra.mxu2 %v177_v28 }
  0x29   :  { %157 = vmatpush.msra.mxu1 %v132_v16 }
  0x2a   :  { %195 = vmatpush.msra.mxu2 %v176_v29 }
  0x2b   :  { %158 = vmatpush.msra.mxu1 %v131_v17 }
  0x2c   :  { %196 = vmatpush.msra.mxu2 %v175_v30 }
  0x2d   :  { %159 = vmatpush.msra.mxu1 %v130_v18 }
  0x2e   :  { %197 = vmatpush.msra.mxu2 %v174_v31 }
  0x2f   :  { %160 = vmatpush.msra.mxu1 %v129_v19 }
  0x30   :  { %198 = vmatpush.msra.mxu2 %v173_v32 }
  0x31   :  { %161 = vmatpush.msra.mxu1 %v128_v20 }
  0x32   :  { %199 = vmatpush.msra.mxu2 %v172_v33 }
  0x33   :  { %162 = vmatpush.msra.mxu1 %v127_v21 }
  0x34   :  { %200 = vmatpush.msra.mxu2 %v171_v34 }
  0x36   :  { %201 = vmatpush.msra.mxu2 %v170_v39 }
  0x38   :  { %202 = vmatpush.msra.mxu2 %v169_v40 }
  0x3a   :  { %203 = vmatpush.msra.mxu2 %v168_v41 }
  0x9a   :  { %v123_v36 = vpop.f32.mrf.mxu0 }
  0x9b   :  { %v124_v37 = vadd.f32 %v237_v35, %v123_v36 }
  0x9d   :  { %v126_v38 = vmax.f32 %v124_v37, 0.0 }
  0x9f   :  { %163 = vmatmul.f32.vlgmr.msra.gmra.mxu1 %v126_v38 }
 0x11c   :  { %v164_v43 = vpop.f32.mrf.mxu1 }
 0x11d   :  { %v165_v44 = vadd.f32 %v238_v42, %v164_v43 }
 0x11f   :  { %v167_v45 = vmax.f32 %v165_v44, 0.0 }
 0x121   :  { %204 = vmatmul.f32.vlgmr.msra.gmra.mxu2 %v167_v45 }
 0x1a4   :  { %v205_v47 = vpop.f32.mrf.mxu2 }
 0x1a5   :  { %v206_v48 = vadd.f32 %v239_v46, %v205_v47 }
 0x1a7   :  { %208 = vst [vmem:[#allocation10] sm:$0xff] %v206_v48 }
 0x1a8   :  { %219 = dma.vmem_to_hbm [thread:$0]  %s215_s25, 128, %s217_s28, [#allocation4]  }
 0x1a9   :  { %366 = dma.done.wait [#allocation4], 128  }
 0x1aa   :  { %367 = vsyncadd [#allocation4], 4294967168 }
 0x1ab   :  { %224 = vsyncpa [#allocation3], 1 }
 0x1ac   :  { %225 = vsyncpa [#allocation6], 1 }
 0x1ad   :  { %226 = vsyncpa [#allocation9], 1 }
 0x1ae   :  { %227 = vsyncpa [#allocation4], 1 }

</bundles_post_ra>
